<compile_context>
chip_gen: v5e
topology: v5e:2x2
jax: 0.10.0
libtpu: 0.0.40
codegen_flags: <defaults>
</compile_context>

<pallas_src>
import math
import functools

import numpy as np
import jax
import jax.numpy as jnp
from jax.experimental import pallas as pl
from jax.experimental.pallas import tpu as pltpu


def _build_pe_table(d_model: int, max_seq_len: int = 80) -> np.ndarray:
    """Replicates the PyTorch module's __init__ loop exactly (including its
    asymmetric exponents: 2*i/d_model for sin, 2*(i+1)/d_model for cos)."""
    assert d_model % 2 == 0, "PositionalEncoder requires an even d_model"
    pe = np.zeros((max_seq_len, d_model), dtype=np.float32)
    for pos in range(max_seq_len):
        for i in range(0, d_model, 2):
            pe[pos, i] = math.sin(pos / 10000 ** (2 * i / d_model))
            pe[pos, i + 1] = math.cos(pos / 10000 ** (2 * (i + 1) / d_model))
    return pe


def _pe_kernel(x_ref, pe_ref, o_ref, *, scale):
    # x_ref/o_ref: (TB, TSD) tile; pe_ref: (1, TSD), broadcast over TB rows
    # (VPU broadcast, free filler under the HBM bottleneck).
    o_ref[...] = x_ref[...] * scale + pe_ref[...]


def _num_tensorcores() -> int:
    """Best-effort TensorCore count (2 on v7x, 1 on v5e/v6e).  Defaults to 1
    — the single-TC tiling policy is correct (just not maximally pipelined)
    on multi-TC parts."""
    try:
        info = pltpu.get_tpu_info()
    except Exception:
        return 1
    for attr in ("num_cores", "num_tensorcores", "tensorcore_count",
                 "cores_per_chip"):
        n = getattr(info, attr, None)
        if isinstance(n, int) and n > 0:
            return n
    return 1


def _vmem_capacity_bytes() -> int:
    try:
        cap = getattr(pltpu.get_tpu_info(), "vmem_capacity_bytes", None)
        if isinstance(cap, int) and cap > 0:
            return cap
    except Exception:
        pass
    return 64 << 20  # conservative (v7x physical)


def _choose_tiles(B, SD, itemsize, target_tile_bytes, num_tc):
    """Pick (tb, tsd): row tile and column tile over the flattened (B, S*D)
    array such that one buffer is ~target_tile_bytes, the last block dims obey
    the (8, 128) rule, and multi-TC chips get >= 2 grid steps per core."""
    # Sublane multiple by dtype packing (f32: 8, bf16: 16, 8-bit: 32).
    sublane = {4: 8, 2: 16, 1: 32}.get(itemsize, 8)
    # Minimum row tile: full batch if small, otherwise one sublane group.
    row_block = B if B <= sublane else sublane

    # Column tile: full row if even the minimum row tile fits the budget,
    # otherwise the largest multiple of 128 elements that does.
    if row_block * SD * itemsize <= target_tile_bytes:
        tsd = SD
    else:
        tsd = (target_tile_bytes // (row_block * itemsize * 128)) * 128
        tsd = min(max(128, tsd), SD)

    # Row tile: grow rows within the budget, rounded to a sublane multiple
    # (or the full batch extent, which is always a legal block dim).
    tb = max(1, target_tile_bytes // (tsd * itemsize))
    if tb >= B:
        tb = B
    else:
        tb = max(row_block, (tb // sublane) * sublane)

    rows_grid = pl.cdiv(B, tb)
    cols_grid = pl.cdiv(SD, tsd)

    # Multi-TC (v7x): make sure each core gets >= 2 steps so its DMA pipeline
    # has something to overlap against.  Single-TC chips skip this entirely
    # (splitting would only add ~0.35 us/step overhead).
    if num_tc > 1:
        min_steps = 2 * num_tc
        while rows_grid * cols_grid < min_steps:
            new_tb = max(sublane, ((tb // 2) // sublane) * sublane)
            if new_tb >= tb or new_tb >= B:
                break
            tb = new_tb
            rows_grid = pl.cdiv(B, tb)

    return tb, tsd


def positional_encoder(
    x: jax.Array,
    pe_table: jax.Array,
    d_model: int,
    *,
    donate_x: bool = False,
    target_tile_bytes: int | None = None,
) -> jax.Array:
    """x: (B, S, D); pe_table: (max_seq_len, D) float32.

    donate_x=True aliases the output onto x inside the pallas_call; only use
    it when the caller also donates x at its jit boundary, otherwise XLA adds
    a defensive copy of x that costs a full extra HBM read+write.
    """
    B, S, D = x.shape
    assert D == d_model, f"last dim {D} != d_model {d_model}"
    assert S <= pe_table.shape[0], (
        f"seq_len {S} exceeds max_seq_len {pe_table.shape[0]}"
    )

    SD = S * D
    itemsize = jnp.dtype(x.dtype).itemsize

    num_tc = _num_tensorcores()
    if target_tile_bytes is None:
        # Bigger tiles on multi-TC (v7x-class) parts: faster HBM makes the
        # fixed per-step overhead a larger fraction of each step.
        target_tile_bytes = (8 << 20) if num_tc > 1 else (4 << 20)

    # Lane-dense flatten: last dim of every block becomes (a 128-multiple
    # chunk of) S*D.  If S*D is not a multiple of 128 the single tail vreg
    # per row gets a masked store — still far better than (B*S, D) at small D.
    x_flat = x.reshape(B, SD)
    # pe is added in x.dtype; for bf16 inputs this is a tiny numeric
    # divergence vs adding an f32 table, in exchange for halved HBM bytes.
    pe_flat = pe_table[:S, :].reshape(1, SD).astype(x.dtype)

    tb, tsd = _choose_tiles(B, SD, itemsize, target_tile_bytes, num_tc)
    rows_grid = pl.cdiv(B, tb)
    cols_grid = pl.cdiv(SD, tsd)
    # Rows innermost so the pe block index only changes on the (outer) column
    # axis: pe is DMA'd at most cols_grid times, and stays VMEM-resident when
    # the whole row fits one column tile (cols_grid == 1).
    grid = (cols_grid, rows_grid)

    # Derive the VMEM limit from the chosen tiles: double-buffered x + out,
    # (up to) double-buffered pe, plus slack.  Capped well under v7x's 64 MiB.
    buf_bytes = tb * tsd * itemsize
    needed = 4 * buf_bytes + 2 * tsd * itemsize
    vmem_limit = min(max(needed + (4 << 20), 16 << 20), 48 << 20,
                     _vmem_capacity_bytes() - (8 << 20))

    kernel = functools.partial(_pe_kernel, scale=math.sqrt(d_model))

    cost = pl.CostEstimate(
        flops=2 * B * SD,                              # one mul + one add per elem
        transcendentals=0,
        bytes_accessed=itemsize * (2 * B * SD + SD),   # read x + pe, write out
    )

    call_kwargs = dict(
        out_shape=jax.ShapeDtypeStruct((B, SD), x.dtype),
        grid_spec=pltpu.PrefetchScalarGridSpec(
            num_scalar_prefetch=0,
            grid=grid,
            in_specs=[
                pl.BlockSpec((tb, tsd), lambda j, i: (i, j)),
                # Row-axis-invariant block index -> pe resident across rows.
                pl.BlockSpec((1, tsd), lambda j, i: (0, j)),
            ],
            out_specs=pl.BlockSpec((tb, tsd), lambda j, i: (i, j)),
        ),
        compiler_params=pltpu.CompilerParams(
            # Both axes are independent elementwise work -> shardable.
            dimension_semantics=("parallel", "parallel"),
            vmem_limit_bytes=int(vmem_limit),
        ),
        cost_estimate=cost,
    )
    if donate_x:
        # Ragged row/column tail blocks read padded garbage but their writes
        # are masked by Pallas, so aliasing onto x is still safe.
        call_kwargs["input_output_aliases"] = {0: 0}

    out_flat = pl.pallas_call(kernel, **call_kwargs)(x_flat, pe_flat)
    return out_flat.reshape(B, S, D)


def _reference(x, pe_table, d_model):
    S = x.shape[1]
    return x * math.sqrt(d_model) + pe_table[None, :S, :].astype(x.dtype)


if __name__ == "__main__":
    d_model = 32
    max_seq_len = 80

    pe_np = _build_pe_table(d_model, max_seq_len)
    pe_table = jnp.asarray(pe_np)

    key = jax.random.PRNGKey(0)
    k1, k2, k3 = jax.random.split(key, 3)

    # 1) Small shape from the module spec: batch=2, seq=8, d_model=32.
    x_small = jax.random.normal(k1, (2, 8, d_model), dtype=jnp.float32)
    out_small = jax.block_until_ready(positional_encoder(x_small, pe_table, d_model))
    np.testing.assert_allclose(
        np.asarray(out_small),
        np.asarray(_reference(x_small, pe_table, d_model)),
        rtol=1e-6, atol=1e-6,
    )

    # 2) Larger batch: exercises row folding (and the >=2-steps-per-core rule
    #    on multi-TC chips).
    x_big = jax.random.normal(k2, (16, 16, d_model), dtype=jnp.float32)
    out_big = jax.block_until_ready(positional_encoder(x_big, pe_table, d_model))
    np.testing.assert_allclose(
        np.asarray(out_big),
        np.asarray(_reference(x_big, pe_table, d_model)),
        rtol=1e-6, atol=1e-6,
    )

    # 3) Small batch / long sequence with a tiny per-buffer budget: forces the
    #    2-D (column-split) tiling path, including a masked ragged column tail.
    x_long = jax.random.normal(k3, (4, 79, d_model), dtype=jnp.float32)
    out_long = jax.block_until_ready(
        positional_encoder(x_long, pe_table, d_model, target_tile_bytes=8 << 10)
    )
    np.testing.assert_allclose(
        np.asarray(out_long),
        np.asarray(_reference(x_long, pe_table, d_model)),
        rtol=1e-6, atol=1e-6,
    )

    print("KERNEL_OK")
</pallas_src>

<mosaic_0001>
module attributes {stable_mosaic.version = 11 : i64} {
  func.func @_pe_kernel(%arg0: i32, %arg1: i32, %arg2: memref<2x256xf32, #tpu.memory_space<vmem>>, %arg3: memref<1x256xf32, #tpu.memory_space<vmem>>, %arg4: memref<2x256xf32, #tpu.memory_space<vmem>>) attributes {dimension_semantics = [#tpu.dimension_semantics<parallel>, #tpu.dimension_semantics<parallel>], iteration_bounds = array<i64: 1, 1>, scalar_prefetch = 0 : i64, scratch_operands = 0 : i64, tpu.core_type = #tpu.core_type<tc>, window_params = [{transform_indices = @transform_0, window_bounds = array<i64: 2, 256>}, {transform_indices = @transform_1, window_bounds = array<i64: 1, 256>}, {transform_indices = @transform_2, window_bounds = array<i64: 2, 256>}]} {
    %c0 = arith.constant 0 : index
    %c0_0 = arith.constant 0 : index
    %0 = vector.load %arg2[%c0, %c0_0] : memref<2x256xf32, #tpu.memory_space<vmem>>, vector<2x256xf32>
    %cst = arith.constant 5.65685415 : f32
    %1 = vector.broadcast %cst : f32 to vector<2x256xf32>
    %2 = arith.mulf %0, %1 : vector<2x256xf32>
    %c0_1 = arith.constant 0 : index
    %c0_2 = arith.constant 0 : index
    %3 = vector.load %arg3[%c0_1, %c0_2] : memref<1x256xf32, #tpu.memory_space<vmem>>, vector<1x256xf32>
    %4 = vector.broadcast %3 : vector<1x256xf32> to vector<2x256xf32>
    %5 = arith.addf %2, %4 : vector<2x256xf32>
    %c0_3 = arith.constant 0 : index
    %c0_4 = arith.constant 0 : index
    %6 = vector.load %arg4[%c0_3, %c0_4] : memref<2x256xf32, #tpu.memory_space<vmem>>, vector<2x256xf32>
    tpu.vector_store %arg4[%c0_3, %c0_4], %5 {strides = array<i32>} : memref<2x256xf32, #tpu.memory_space<vmem>>, vector<2x256xf32>,
    return
  }
  func.func @transform_0(%arg0: i32, %arg1: i32) -> (i32, i32) {
    %c0_i32 = arith.constant 0 : i32
    return %arg1, %arg0 : i32, i32
  }
  func.func @transform_1(%arg0: i32, %arg1: i32) -> (i32, i32) {
    %c0_i32 = arith.constant 0 : i32
    %c0_i32_0 = arith.constant 0 : i32
    return %c0_i32, %arg0 : i32, i32
  }
  func.func @transform_2(%arg0: i32, %arg1: i32) -> (i32, i32) {
    %c0_i32 = arith.constant 0 : i32
    return %arg1, %arg0 : i32, i32
  }
}

</mosaic_0001>

<bundles_post_ra>
// kernel: tpu_custom_call.1
= control target key start
LH: loop header
LB: loop body
LE: loop exit
PB: predicated region body
PF: predicated region fallthrough
CT: control target
= control target key end

     0   :  { %7 = vsyncpa [#allocation3], 0  ;;  %s178_s0 = inlined_call_operand.hbm [shape: f32[2,256], index: 0, kind: input, shape index: {}]   ;;  %s179_s1 = inlined_call_operand.hbm [shape: f32[1,256], index: 1, kind: input, shape index: {}]   ;;  %s180_s2 = inlined_call_operand.hbm [shape: f32[2,256], index: 2, kind: output, shape index: {}]  }
   0x1   :  { %8 = vsyncpa [#allocation6], 0 }
   0x2   :  { %9 = vsyncpa [#allocation4], 0  ;;  %s15_s11 = sshll.u32 %s178_s0, 4  ;;  %s151_s12 = smov [#allocation2]   ;;  %s16_s11 = int_to_ptr.hbm [resolvable:$true] %s15_s11 }
   0x3   :  { %s17_s13 = sshll.u32 %s151_s12, 4  ;;  %s26_s16 = sshll.u32 %s179_s1, 4  ;;  %s18_s13 = int_to_ptr.vmem [resolvable:$true] %s17_s13  ;;  %s27_s16 = int_to_ptr.hbm [resolvable:$true] %s26_s16 }
   0x4   :  { %20 = dma.hbm_to_vmem [thread:$0]  %s16_s11, 64, %s18_s13, [#allocation3]  }
   0x5   :  { %s152_s17 = smov [#allocation5]  }
   0x6   :  { %s28_s18 = sshll.u32 %s152_s17, 4  ;;  %s29_s18 = int_to_ptr.vmem [resolvable:$true] %s28_s18 }
   0x7   :  { %31 = dma.hbm_to_vmem [thread:$0]  %s27_s16, 32, %s29_s18, [#allocation6]  }
   0x8   :  { %145 = dma.done.wait [#allocation3], 64  }
   0x9   :  { %146 = vsyncadd [#allocation3], 4294967232 }
   0xa   :  { %147 = dma.done.wait [#allocation6], 32  }
   0xb   :  { %148 = vsyncadd [#allocation6], 4294967264  ;;  %v40_v0 = vld [vmem:[#allocation2] sm:$0xf]  ;;  %v42_v1 = vld [vmem:[#allocation5] sm:$0x3] }
   0xc   :  { %v44_v2 = vperm.slane %v42_v1, 0  ;;  %v45_v3 = vperm.slane %v42_v1, 1  ;;  %v41_v4 = vmul.f32 5.656854, %v40_v0  ;;  %vm47_vm0 = vcmask 1041408   ;;  %s153_s0 = smov [#allocation7]  }
   0xd   :  { %s57_s19 = sshll.u32 %s153_s0, 4  ;;  %s59_s21 = sshll.u32 %s180_s2, 4  ;;  %s58_s19 = int_to_ptr.vmem [resolvable:$true] %s57_s19  ;;  %s60_s21 = int_to_ptr.hbm [resolvable:$true] %s59_s21 }
   0xe   :  { %v46_v5 = vrot.slane %v45_v3, 6 }
  0x10   :  { %v48_v6 = vsel %vm47_vm0, %v44_v2, %v46_v5 }
  0x11   :  { %v50_v7 = vadd.f32 %v48_v6, %v41_v4 }
  0x13   :  { %51 = vst [vmem:[#allocation7] sm:$0xf] %v50_v7 }
  0x14   :  { %62 = dma.vmem_to_hbm [thread:$0]  %s58_s19, 64, %s60_s21, [#allocation4]  }
  0x15   :  { %149 = dma.done.wait [#allocation4], 64  }
  0x16   :  { %150 = vsyncadd [#allocation4], 4294967232 }
  0x17   :  { %67 = vsyncpa [#allocation3], 1 }
  0x18   :  { %68 = vsyncpa [#allocation6], 1 }
  0x19   :  { %69 = vsyncpa [#allocation4], 1 }

</bundles_post_ra>
